<compile_context>
chip_gen: v7x
topology: tpu7x:2x2x1
jax: 0.10.0
libtpu: 0.0.40
codegen_flags: <defaults>
</compile_context>

<pallas_src>
import jax
import jax.numpy as jnp
from jax.experimental import pallas as pl
from jax.experimental.pallas import tpu as pltpu


def _round_up(v, m):
    return ((v + m - 1) // m) * m


def _make_readout_kernel(f_in_node, f_in_global, f_out_node, f_out_global,
                         bias_row):
    """Kernel body shared by the gridless and row-tiled paths.

    Packed weight buffer layout (built once at init):
      rows [0, f_in_node)    cols [0, f_out_node)                       node W
      rows [0, f_in_global)  cols [f_out_node, f_out_node+f_out_global) glob W
      row  bias_row (8-aligned)  same column split                      biases
    All slices below are static and start at 8-aligned sublane offsets, so
    they never force a relayout copy, for arbitrary feature sizes.
    """

    def kernel(x_ref, u_ref, w_ref, xo_ref, uo_ref):
        w = w_ref[...]                                    # (rows, cols) f32

        # ---- node head: sigmoid(x @ Wn + bn), f32 end-to-end -------------
        wn = w[0:f_in_node, 0:f_out_node]
        bn = w[bias_row:bias_row + 1, 0:f_out_node]
        acc_n = jnp.dot(x_ref[...], wn, preferred_element_type=jnp.float32)
        xo_ref[...] = jax.nn.sigmoid(acc_n + bn).astype(xo_ref.dtype)

        # ---- global head: sigmoid(u @ Wg + bg) ----------------------------
        # Recomputed every grid step of the tiled path (tiny matmul, hidden
        # under the x-block DMA); every step writes the identical value so
        # the node-row axis can safely be "parallel" for v7x megacore.
        wg = w[0:f_in_global, f_out_node:f_out_node + f_out_global]
        bg = w[bias_row:bias_row + 1, f_out_node:f_out_node + f_out_global]
        acc_g = jnp.dot(u_ref[...], wg, preferred_element_type=jnp.float32)
        uo_ref[...] = jax.nn.sigmoid(acc_g + bg).astype(uo_ref.dtype)

    return kernel


# Stay gridless while the whole working set fits comfortably in scoped VMEM.
# 24 MiB cutoff + explicit 32 MiB scoped limit is safe on every generation
# (v5e default scoped is 16 MiB, v6e/v7x 32 MiB, v7x physical is only 64 MiB).
_GRIDLESS_BYTE_CUTOFF = 24 * 1024 * 1024
_GRIDLESS_VMEM_LIMIT = 32 * 1024 * 1024


def readout_forward(x, u, w_packed, *, f_out_node, f_out_global,
                    tile_m=1024, force_tiled=False):
    """Fused forward: (sigmoid(x@Wn+bn), sigmoid(u@Wg+bg)) in one pallas_call."""
    n, f_in_n = x.shape
    g, f_in_g = u.shape
    bias_row = w_packed.shape[0] - 8      # bias block occupies the last 8 rows
    kernel = _make_readout_kernel(f_in_n, f_in_g, f_out_node, f_out_global,
                                  bias_row)
    out_shape = (jax.ShapeDtypeStruct((n, f_out_node), jnp.float32),
                 jax.ShapeDtypeStruct((g, f_out_global), jnp.float32))

    resident_bytes = 4 * (x.size + u.size + w_packed.size
                          + n * f_out_node + g * f_out_global)
    use_tiled = force_tiled or resident_bytes > _GRIDLESS_BYTE_CUTOFF

    if not use_tiled:
        # Gridless: all operands fully VMEM-resident, one kernel invocation,
        # no pipeline prologue/epilogue, 3 input DMAs total.
        vmem = pl.BlockSpec(memory_space=pltpu.MemorySpace.VMEM)
        return pl.pallas_call(
            kernel,
            out_shape=out_shape,
            in_specs=[vmem, vmem, vmem],
            out_specs=(vmem, vmem),
            compiler_params=pltpu.CompilerParams(
                vmem_limit_bytes=_GRIDLESS_VMEM_LIMIT),
        )(x, u, w_packed)

    # Row-tiled path for large node counts: x / xo streamed in TM-row blocks
    # (double-buffered by the BlockSpec pipeline); weights and the tiny global
    # operands stay resident.  The (TM, 2) output stores are masked vst.msk by
    # design -- padding the output to 128 lanes in HBM would cost 64x more
    # writeback in this memory-bound regime, so we keep the narrow layout.
    tm = min(tile_m, _round_up(n, 8))
    wr, wc = w_packed.shape
    return pl.pallas_call(
        kernel,
        out_shape=out_shape,
        grid=(pl.cdiv(n, tm),),
        in_specs=[pl.BlockSpec((tm, f_in_n), lambda i: (i, 0)),
                  pl.BlockSpec((g, f_in_g), lambda i: (0, 0)),
                  pl.BlockSpec((wr, wc), lambda i: (0, 0))],
        out_specs=(pl.BlockSpec((tm, f_out_node), lambda i: (i, 0)),
                   pl.BlockSpec((g, f_out_global), lambda i: (0, 0))),
        compiler_params=pltpu.CompilerParams(
            dimension_semantics=("parallel",)),   # v7x megacore split over rows
    )(x, u, w_packed)


class ReadoutPallas:
    """JAX/Pallas equivalent of the PyTorch Readout module."""

    def __init__(self, in_node_feats, in_global_feats, key):
        k1, k2, k3, k4 = jax.random.split(key, 4)
        self.f_out_node = 2
        self.f_out_global = 5
        # Deterministic init mimicking nn.Linear's uniform(-1/sqrt(fan_in), +).
        bound_n = 1.0 / (in_node_feats ** 0.5)
        bound_g = 1.0 / (in_global_feats ** 0.5)
        # Weights stored as [in, out] (transposed vs. PyTorch's [out, in]).
        self.node_w = jax.random.uniform(k1, (in_node_feats, self.f_out_node),
                                         minval=-bound_n, maxval=bound_n,
                                         dtype=jnp.float32)
        self.node_b = jax.random.uniform(k2, (self.f_out_node,),
                                         minval=-bound_n, maxval=bound_n,
                                         dtype=jnp.float32)
        self.global_w = jax.random.uniform(k3, (in_global_feats, self.f_out_global),
                                           minval=-bound_g, maxval=bound_g,
                                           dtype=jnp.float32)
        self.global_b = jax.random.uniform(k4, (self.f_out_global,),
                                           minval=-bound_g, maxval=bound_g,
                                           dtype=jnp.float32)
        # Pack both heads (weights + bias row) into ONE padded f32 buffer at
        # init: a single weight DMA per call, and the bias row sits at an
        # 8-aligned sublane offset so in-kernel slices are copy-free.
        bias_row = max(_round_up(in_node_feats, 8), _round_up(in_global_feats, 8))
        cols = _round_up(self.f_out_node + self.f_out_global, 8)
        buf = jnp.zeros((bias_row + 8, cols), jnp.float32)
        buf = buf.at[:in_node_feats, :self.f_out_node].set(self.node_w)
        buf = buf.at[:in_global_feats,
                     self.f_out_node:self.f_out_node + self.f_out_global].set(self.global_w)
        buf = buf.at[bias_row, :self.f_out_node].set(self.node_b)
        buf = buf.at[bias_row,
                     self.f_out_node:self.f_out_node + self.f_out_global].set(self.global_b)
        self.w_packed = buf

    def __call__(self, x, u, *, force_tiled=False):
        return readout_forward(x, u, self.w_packed,
                               f_out_node=self.f_out_node,
                               f_out_global=self.f_out_global,
                               force_tiled=force_tiled)


if __name__ == "__main__":
    key = jax.random.PRNGKey(0)
    k_params, k_x, k_u, k_xb = jax.random.split(key, 4)

    in_node_feats = 16
    in_global_feats = 32
    num_nodes = 8       # x: (num_nodes, in_node_feats)
    num_graphs = 2      # u: (num_graphs, in_global_feats)

    x = jax.random.normal(k_x, (num_nodes, in_node_feats), dtype=jnp.float32)
    u = jax.random.normal(k_u, (num_graphs, in_global_feats), dtype=jnp.float32)

    model = ReadoutPallas(in_node_feats, in_global_feats, k_params)

    # ---- small shapes: fused gridless (fully VMEM-resident) path ----------
    x_out, u_out = model(x, u)
    jax.block_until_ready((x_out, u_out))

    x_ref = jax.nn.sigmoid(x @ model.node_w + model.node_b)
    u_ref = jax.nn.sigmoid(u @ model.global_w + model.global_b)
    assert x_out.shape == (num_nodes, 2)
    assert u_out.shape == (num_graphs, 5)
    # f32 operands / f32 accumulation: typically ~1e-6 error; the tolerance
    # leaves headroom for generations whose default MXU contract precision
    # decomposes f32 into bf16 passes.
    tol = 5e-3
    assert jnp.allclose(x_out, x_ref, atol=tol), float(jnp.max(jnp.abs(x_out - x_ref)))
    assert jnp.allclose(u_out, u_ref, atol=tol), float(jnp.max(jnp.abs(u_out - u_ref)))

    # ---- larger node count: exercise the row-tiled "parallel" path --------
    num_nodes_big = 4096
    x_big = jax.random.normal(k_xb, (num_nodes_big, in_node_feats),
                              dtype=jnp.float32)
    xb_out, ub_out = model(x_big, u, force_tiled=True)
    jax.block_until_ready((xb_out, ub_out))

    xb_ref = jax.nn.sigmoid(x_big @ model.node_w + model.node_b)
    assert xb_out.shape == (num_nodes_big, 2)
    assert ub_out.shape == (num_graphs, 5)
    assert jnp.allclose(xb_out, xb_ref, atol=tol), float(jnp.max(jnp.abs(xb_out - xb_ref)))
    assert jnp.allclose(ub_out, u_ref, atol=tol), float(jnp.max(jnp.abs(ub_out - u_ref)))

    print("KERNEL_OK")
</pallas_src>

<mosaic_0001>
module attributes {stable_mosaic.version = 11 : i64} {
  func.func @kernel(%arg0: memref<8x16xf32, #tpu.memory_space<vmem>>, %arg1: memref<2x32xf32, #tpu.memory_space<vmem>>, %arg2: memref<40x8xf32, #tpu.memory_space<vmem>>, %arg3: memref<8x2xf32, #tpu.memory_space<vmem>>, %arg4: memref<2x5xf32, #tpu.memory_space<vmem>>) attributes {dimension_semantics = [], scalar_prefetch = 0 : i64, scratch_operands = 0 : i64, tpu.core_type = #tpu.core_type<tc>} {
    %c0 = arith.constant 0 : index
    %c0_0 = arith.constant 0 : index
    %0 = vector.load %arg2[%c0, %c0_0] : memref<40x8xf32, #tpu.memory_space<vmem>>, vector<40x8xf32>
    %1 = vector.extract_strided_slice %0 {offsets = [0, 0], sizes = [16, 2], strides = [1, 1]} : vector<40x8xf32> to vector<16x2xf32>
    %2 = vector.extract_strided_slice %0 {offsets = [32, 0], sizes = [1, 2], strides = [1, 1]} : vector<40x8xf32> to vector<1x2xf32>
    %c0_1 = arith.constant 0 : index
    %c0_2 = arith.constant 0 : index
    %3 = vector.load %arg0[%c0_1, %c0_2] : memref<8x16xf32, #tpu.memory_space<vmem>>, vector<8x16xf32>
    %cst = arith.constant dense<0.000000e+00> : vector<8x2xf32>
    %4 = tpu.matmul %3, %1, %cst {dimension_numbers = #tpu.dot_dimension_numbers<[1], [0], [0], [1], [0, 0, 1, 1], [], []>} : vector<8x16xf32>, vector<16x2xf32>, vector<8x2xf32> -> vector<8x2xf32>
    %5 = vector.broadcast %2 : vector<1x2xf32> to vector<8x2xf32>
    %6 = arith.addf %4, %5 : vector<8x2xf32>
    %7 = arith.negf %6 : vector<8x2xf32>
    %8 = math.exp %7 : vector<8x2xf32>
    %cst_3 = arith.constant 1.000000e+00 : f32
    %9 = vector.broadcast %cst_3 : f32 to vector<8x2xf32>
    %10 = arith.addf %9, %8 : vector<8x2xf32>
    %11 = arith.divf %9, %10 : vector<8x2xf32>
    %c0_4 = arith.constant 0 : index
    %c0_5 = arith.constant 0 : index
    %12 = vector.load %arg3[%c0_4, %c0_5] : memref<8x2xf32, #tpu.memory_space<vmem>>, vector<8x2xf32>
    tpu.vector_store %arg3[%c0_4, %c0_5], %11 {strides = array<i32>} : memref<8x2xf32, #tpu.memory_space<vmem>>, vector<8x2xf32>,
    %13 = vector.extract_strided_slice %0 {offsets = [0, 2], sizes = [32, 5], strides = [1, 1]} : vector<40x8xf32> to vector<32x5xf32>
    %14 = vector.extract_strided_slice %0 {offsets = [32, 2], sizes = [1, 5], strides = [1, 1]} : vector<40x8xf32> to vector<1x5xf32>
    %c0_6 = arith.constant 0 : index
    %c0_7 = arith.constant 0 : index
    %15 = vector.load %arg1[%c0_6, %c0_7] : memref<2x32xf32, #tpu.memory_space<vmem>>, vector<2x32xf32>
    %cst_8 = arith.constant dense<0.000000e+00> : vector<2x5xf32>
    %16 = tpu.matmul %15, %13, %cst_8 {dimension_numbers = #tpu.dot_dimension_numbers<[1], [0], [0], [1], [0, 0, 1, 1], [], []>} : vector<2x32xf32>, vector<32x5xf32>, vector<2x5xf32> -> vector<2x5xf32>
    %17 = vector.broadcast %14 : vector<1x5xf32> to vector<2x5xf32>
    %18 = arith.addf %16, %17 : vector<2x5xf32>
    %19 = arith.negf %18 : vector<2x5xf32>
    %20 = math.exp %19 : vector<2x5xf32>
    %cst_9 = arith.constant 1.000000e+00 : f32
    %21 = vector.broadcast %cst_9 : f32 to vector<2x5xf32>
    %22 = arith.addf %21, %20 : vector<2x5xf32>
    %23 = arith.divf %21, %22 : vector<2x5xf32>
    %c0_10 = arith.constant 0 : index
    %c0_11 = arith.constant 0 : index
    %24 = vector.load %arg4[%c0_10, %c0_11] : memref<2x5xf32, #tpu.memory_space<vmem>>, vector<2x5xf32>
    tpu.vector_store %arg4[%c0_10, %c0_11], %23 {strides = array<i32>} : memref<2x5xf32, #tpu.memory_space<vmem>>, vector<2x5xf32>,
    return
  }
}

</mosaic_0001>

<bundles_post_ra>
// kernel: tpu_custom_call.1
= control target key start
LH: loop header
LB: loop body
LE: loop exit
PB: predicated region body
PF: predicated region fallthrough
CT: control target
= control target key end

     0   :  { %v316_v5 = vmov 0.0|0.0   ;;  %vm317_vm0 = vmmov 0   ;;  %v318_v7 = vmov 0.0   ;;  %v23_v8 = vlaneseq  ;;  %s382_s0 = inlined_call_operand.vmem [shape: f32[8,16], index: 0, kind: input, shape index: {}]   ;;  %s383_s1 = inlined_call_operand.vmem [shape: f32[2,32], index: 1, kind: input, shape index: {}]   ;;  %s384_s2 = inlined_call_operand.vmem [shape: f32[40,8], index: 2, kind: input, shape index: {}]   ;;  %s385_s3 = inlined_call_operand.vmem [shape: f32[8,2], index: 3, kind: output, shape index: {0}]   ;;  %s386_s4 = inlined_call_operand.hbm [shape: f32[2,5], index: 4, kind: output, shape index: {1}]  }
   0x1   :  { %v17_v0 = vld [vmem:[%s384_s2] sm:$0xff]  ;;  %v18_v1 = vld [vmem:[%s384_s2 + $0x8] sm:$0xff]  ;;  %v19_v2 = vld [vmem:[%s384_s2 + $0x10] sm:$0xff]  ;;  %263 = vmatprep.subr.bf16.mxu1 %v316_v5  ;;  %260 = vmatprep.subr.bf16.mxu0 %v316_v5 }
   0x2   :  { %v274_v3 = vpack.i.bf16 %v18_v1, %v17_v0  ;;  %v20_v4 = vld [vmem:[%s384_s2 + $0x18] sm:$0xff]  ;;  %v261_v6 = vpack.c.bf16 %v18_v1, %v17_v0  ;;  %246 = vmatprep.mubr.msk.f32.mxu0 %vm317_vm0, %v318_v7  ;;  %257 = vmatprep.mubr.msk.f32.mxu1 %vm317_vm0, %v318_v7 }
   0x3   :  { %10 = vsyncpa [#allocation3], 0  ;;  %s319_s23 = smov 126   ;;  %v279_v9 = vpack.i.bf16 %v20_v4, %v19_v2  ;;  %v22_v10 = vld [vmem:[%s382_s0] sm:$0xff]  ;;  %vm27_vm1 = vcmask 130048   ;;  %v24_v11 = vshrl.u32 %v23_v8, 7 }
   0x4   :  { %275 = vrot.lane.b32.xlu0 %v274_v3, %s319_s23  ;;  %262 = vmatpush3.bf16.msra.mxu0 %v261_v6  ;;  %v21_v12 = vld [vmem:[%s384_s2 + $0x20] sm:$0xff]  ;;  %vm130_vm2 = vcmask 261120   ;;  %vm107_vm3 = vcmask 15360   ;;  %vm210_vm4 = vcmask 33792  }
   0x5   :  { %v25_v13 = vsub.s32 0, %v24_v11  ;;  %v109_v23 = vld [vmem:[%s383_s1] sm:$0x3]  ;;  %s320_s1 = smov [#allocation2]  }
   0x6   :  { %s220_s30 = sshll.u32 %s320_s1, 4  ;;  %s221_s30 = int_to_ptr.vmem [resolvable:$true] %s220_s30 }
   0x7   :  { %247 = vmatmul.mubr.msk.f32.vlgmr.msra.gmra.mrb[0].mxu0 %vm27_vm1, %v22_v10  ;;  %v26_v14 = vrot.slane %v21_v12, %v25_v13  ;;  %s292_s5 = scalar_lea.vmem %s221_s30, 32  ;;  %p297_p1 = scmp.lt.s32.totalorder %s221_s30, %s221_s30 }
   0x8   :  { %280 = vrot.lane.b32.xlu0 %v279_v9, %s319_s23  ;;  %p293_p0 = scmp.ne.s32.totalorder %s221_s30, %s292_s5  ;;  %p298_p2 = scmp.lt.s32.totalorder %s292_s5, %s292_s5 }
   0x9   :  { %127 = vrot.lane.b32.xlu1 %v26_v14, %s319_s23 }
   0xa   :  { %p299_p3 = por %p298_p2, %p297_p1 }
   0xc   :  { %p300_p4 = pnand %p299_p3, %p293_p0 }
  0x76   :  { %v276_v15 = vpop.permute.xlu0 %275 }
  0x77   :  { %v278_v16 = vunpack.i.h.bf16 %v276_v15  ;;  %v277_v17 = vunpack.i.l.bf16 %v276_v15 }
  0x79   :  { %v264_v18 = vpack.c.bf16 %v278_v16, %v277_v17 }
  0x7a   :  { %v281_v19 = vpop.permute.xlu0 %280 }
  0x7b   :  { %v283_v20 = vunpack.i.h.bf16 %v281_v19  ;;  %v282_v21 = vunpack.i.l.bf16 %v281_v19  ;;  %265 = vmatpush3.bf16.msra.mxu1 %v264_v18  ;;  %v128_v31 = vpop.permute.xlu1 %127 }
  0x7c   :  { %266 = vmatprep.subr.bf16.mxu1 %v316_v5 }
  0x7d   :  { %v267_v22 = vpack.c.bf16 %v283_v20, %v282_v21 }
  0x7f   :  { %268 = vmatpush3.bf16.msra.mxu1 %v267_v22 }
  0x82   :  { %258 = vmatmul.mubr.msk.f32.vlgmr.msra.gmra.mrb[0].mxu1 %vm130_vm2, %v109_v23 }
  0xda   :  { %v97_v24 = vpop.f32.mrb[0].mxu0 }
  0xdb   :  { %v98_v25 = vadd.f32 %v97_v24, %v26_v14  ;;  %v248_v26 = vpop.f32.mrb[1].mxu0 }
  0xdd   :  { %v231_v27 = vmul.f32 -1.442695, %v98_v25 }
  0xdf   :  { %284 = vpow2.f32 %v231_v27 }
  0xe9   :  { %v285_v28 = vpop.eup %284 }
  0xea   :  { %v104_v29 = vadd.f32 1.0, %v285_v28 }
  0xec   :  { %286 = vrcp.f32 %v104_v29 }
  0xf6   :  { %v287_v30 = vpop.eup %286 }
  0xf7   :  { %108 = vst.msk [vmem:[%s385_s3] sm:$0xff] %vm107_vm3, %v287_v30 }
 0x155   :  { %v200_v32 = vpop.f32.mrb[0].mxu1 }
 0x156   :  { %v201_v33 = vadd.f32 %v200_v32, %v128_v31  ;;  %v259_v34 = vpop.f32.mrb[1].mxu1 }
 0x158   :  { %v233_v35 = vmul.f32 -1.442695, %v201_v33 }
 0x15a   :  { %288 = vpow2.f32 %v233_v35 }
 0x164   :  { %v289_v36 = vpop.eup %288 }
 0x165   :  { %v207_v37 = vadd.f32 1.0, %v289_v36 }
 0x167   :  { %290 = vrcp.f32 %v207_v37 }
 0x171   :  { %v291_v38 = vpop.eup %290 }
 0x172   :  { %211 = vst.msk [vmem:[#allocation2] sm:$0x3] %vm210_vm4, %v291_v38 }
 0x173   :  { %303 = shalt.err (!%p300_p4)
}
 0x174   :  { %s304_s7 = scalar_lea.hbm %s386_s4, 32 }
 0x175   :  { %p305_p5 = scmp.ne.s32.totalorder %s386_s4, %s304_s7  ;;  %p308_p6 = scmp.lt.u32.totalorder %s304_s7, %s386_s4 }
 0x177   :  { %p310_p7 = pnand %p308_p6, %p305_p5 }
 0x179   :  { %313 = shalt.err (!%p310_p7)
}
 0x17a   :  { %223 = dma.vmem_to_hbm [thread:$0]  %s221_s30, 32, %s386_s4, [#allocation3]  }
 0x17b   :  { %314 = dma.done.wait [#allocation3], 32  }
 0x17c   :  { %315 = vsyncadd [#allocation3], 4294967264 }
 0x17d   :  { %229 = vsyncpa [#allocation3], 1 }

</bundles_post_ra>
